<compile_context>
chip_gen: v5e
topology: v5e:2x2
jax: 0.10.0
libtpu: 0.0.40
codegen_flags: <defaults>
</compile_context>

<pallas_src>
import functools
import math

import jax
import jax.numpy as jnp
from jax import lax
from jax.experimental import pallas as pl
from jax.experimental.pallas import tpu as pltpu


def _nonlocal_kernel(x_ref, wtp_ref, btp_ref, wg_ref, bg_ref, wo_ref, bo_ref,
                     out_ref, f_acc, sm_buf, *, bc, compute_dtype):
    phase = pl.program_id(1)          # 0: accumulate f over N-tiles, 1: aggregate
    t = pl.program_id(2)              # N-tile index

    x = x_ref[0]                      # (C, tile_n), input dtype (f32)
    xc = x.astype(compute_dtype)      # bf16 MXU operand in the fast path

    @pl.when(jnp.logical_and(phase == 0, t == 0))
    def _init():
        f_acc[...] = jnp.zeros_like(f_acc)

    @pl.when(phase == 0)
    def _accumulate_f():
        # Fused theta/phi projection: one (2bc, C) @ (C, tile_n) matmul.
        tp = jnp.dot(wtp_ref[...], xc,
                     preferred_element_type=jnp.float32) + btp_ref[...]
        theta = tp[:bc].astype(compute_dtype)    # (bc, tile_n)
        phi = tp[bc:].astype(compute_dtype)      # (bc, tile_n)
        # f[i, j] += sum_n phi[i, n] * theta[j, n]  -- contract N directly,
        # no explicit transpose / relayout.
        f_acc[...] += lax.dot_general(
            phi, theta, dimension_numbers=(((1,), (1,)), ((), ())),
            preferred_element_type=jnp.float32)

    @pl.when(phase == 1)
    def _aggregate():
        @pl.when(t == 0)
        def _softmax():
            f = f_acc[...]                                        # (bc, bc) f32
            f = f - jnp.max(f, axis=-1, keepdims=True)
            e = jnp.exp(f)
            inv = pl.reciprocal(jnp.sum(e, axis=-1, keepdims=True), approx=True)
            sm_buf[...] = (e * inv).astype(sm_buf.dtype)

        g = (jnp.dot(wg_ref[...], xc, preferred_element_type=jnp.float32)
             + bg_ref[...]).astype(compute_dtype)                 # (bc, tile_n)
        # block_out[k, n] = sum_j sm[j, k] * g[j, n]  (transpose-free)
        blk = lax.dot_general(
            sm_buf[...], g, dimension_numbers=(((0,), (0,)), ((), ())),
            preferred_element_type=jnp.float32).astype(compute_dtype)
        y = (jnp.dot(wo_ref[...], blk, preferred_element_type=jnp.float32)
             + bo_ref[...] + x.astype(jnp.float32))               # (C, tile_n)
        out_ref[0] = y.astype(out_ref.dtype)


def nonlocal_block(x_nchw, params, *, compute_dtype=jnp.bfloat16, tile_n=None):
    """x_nchw: (B, C, H, W). params: PyTorch-convention weights (see init_params)."""
    B, C, H, W = x_nchw.shape
    N = H * W
    bc = params["w_theta"].shape[0]

    if tile_n is None:
        tile_n = N
        for cand in (2048, 1024, 512, 256, 128):
            if N % cand == 0:
                tile_n = cand
                break
    assert N % tile_n == 0, "tile_n must divide H*W"
    assert tile_n == N or tile_n % 128 == 0, "tile_n must be a multiple of 128"
    n_tiles = N // tile_n

    # Free reshape: N stays contiguous on the lane axis, no HBM transpose.
    x = x_nchw.reshape(B, C, N)

    # Pack theta+phi into one (2bc, C) weight (single projection matmul in
    # phase 0); g is kept separate since it is only needed in phase 1.
    # Weights in compute_dtype (bf16 fast path); biases stay f32 (VPU add).
    w_tp = jnp.concatenate([params["w_theta"], params["w_phi"]], axis=0).astype(compute_dtype)
    b_tp = jnp.concatenate([params["b_theta"], params["b_phi"]], axis=0).reshape(2 * bc, 1).astype(jnp.float32)
    w_g = params["w_g"].astype(compute_dtype)                    # (bc, C)
    b_g = params["b_g"].reshape(bc, 1).astype(jnp.float32)
    w_o = params["w_out"].astype(compute_dtype)                  # (C, bc)
    b_o = params["b_out"].reshape(C, 1).astype(jnp.float32)

    kernel = functools.partial(_nonlocal_kernel, bc=bc, compute_dtype=compute_dtype)

    # Weights/biases have constant index maps so they are fetched once; on v7x
    # pipeline_mode=pl.Buffered(1) could additionally halve their VMEM copies.
    full = lambda a: pl.BlockSpec(a.shape, lambda b, p, t: (0,) * a.ndim)
    x_spec = pl.BlockSpec((1, C, tile_n), lambda b, p, t: (b, 0, t))
    # During phase 0 the output block index stays at tile 0 (t * p == 0), so no
    # writeback happens until phase 1 has actually written the tile.
    out_spec = pl.BlockSpec((1, C, tile_n), lambda b, p, t: (b, 0, t * p))

    out = pl.pallas_call(
        kernel,
        out_shape=jax.ShapeDtypeStruct((B, C, N), x_nchw.dtype),
        grid_spec=pltpu.PrefetchScalarGridSpec(
            num_scalar_prefetch=0,
            grid=(B, 2, n_tiles),
            in_specs=[x_spec,
                      full(w_tp), full(b_tp),
                      full(w_g), full(b_g),
                      full(w_o), full(b_o)],
            out_specs=out_spec,
            scratch_shapes=[pltpu.VMEM((bc, bc), jnp.float32),    # f accumulator
                            pltpu.VMEM((bc, bc), compute_dtype)], # softmax(f)
        ),
        compiler_params=pltpu.CompilerParams(
            dimension_semantics=("parallel", "arbitrary", "arbitrary"),
            vmem_limit_bytes=64 * 1024 * 1024,   # raise scoped limit (v5e default 16 MiB)
        ),
    )(x, w_tp, b_tp, w_g, b_g, w_o, b_o)

    return out.reshape(B, C, H, W)
    # TODO(synk): for v5e, bc that is not a multiple of 128 leaves MXU columns /
    # lanes partially filled; zero-padding bc would change the softmax
    # normalization, so proper padding requires masking the padded logits.


def init_params(key, indims):
    """PyTorch-convention shapes: conv weight (Cout, Cin), bias (Cout,)."""
    bc = indims // 2
    std = math.sqrt(2.0 / (3.0 * 3.0 * bc))
    keys = jax.random.split(key, 8)
    p = {}
    p["w_theta"] = std * jax.random.normal(keys[0], (bc, indims), jnp.float32)
    p["w_phi"]   = std * jax.random.normal(keys[1], (bc, indims), jnp.float32)
    p["w_g"]     = std * jax.random.normal(keys[2], (bc, indims), jnp.float32)
    p["w_out"]   = std * jax.random.normal(keys[3], (indims, bc), jnp.float32)
    p["b_theta"] = 0.1 * jax.random.uniform(keys[4], (bc,), jnp.float32, -1.0, 1.0)
    p["b_phi"]   = 0.1 * jax.random.uniform(keys[5], (bc,), jnp.float32, -1.0, 1.0)
    p["b_g"]     = 0.1 * jax.random.uniform(keys[6], (bc,), jnp.float32, -1.0, 1.0)
    p["b_out"]   = 0.1 * jax.random.uniform(keys[7], (indims,), jnp.float32, -1.0, 1.0)
    return p


def nonlocal_block_reference(x_nchw, params):
    """Plain-JAX reference mirroring the PyTorch forward exactly (NCHW math)."""
    B, C, H, W = x_nchw.shape
    N = H * W
    xf = x_nchw.reshape(B, C, N).astype(jnp.float32)               # (B, C, N)

    def conv1x1(w, b):                                             # w: (Cout, Cin)
        return jnp.einsum("oc,bcn->bon", w, xf) + b.reshape(1, -1, 1)

    theta = conv1x1(params["w_theta"], params["b_theta"])          # (B, bc, N)
    phi   = conv1x1(params["w_phi"],   params["b_phi"])            # (B, bc, N)
    g     = conv1x1(params["w_g"],     params["b_g"])              # (B, bc, N)
    f = jnp.einsum("bin,bjn->bij", phi, theta)                     # (B, bc, bc)
    sm = jax.nn.softmax(f, axis=-1)
    blk = jnp.einsum("bjn,bjk->bkn", g, sm)                        # (B, bc, N)
    y = jnp.einsum("ck,bkn->bcn", params["w_out"], blk) + params["b_out"].reshape(1, -1, 1)
    return (y + xf).reshape(B, C, H, W)


if __name__ == "__main__":
    B, C, H, W = 2, 4, 16, 16          # indims=4 -> bottle_channels=2, N=256
    key = jax.random.PRNGKey(0)
    kx, kp = jax.random.split(key)
    x = jax.random.normal(kx, (B, C, H, W), jnp.float32)
    params = init_params(kp, C)

    ref = jax.block_until_ready(nonlocal_block_reference(x, params))

    # 1) f32 compute path (tile_n=128 -> 2 N-tiles, exercises the two-phase
    #    accumulation): strict check of kernel structure & math.
    out_f32 = jax.block_until_ready(
        nonlocal_block(x, params, compute_dtype=jnp.float32, tile_n=128))
    assert out_f32.shape == (B, C, H, W)
    assert jnp.allclose(out_f32, ref, atol=5e-3, rtol=5e-3), "f32 path mismatch"

    # 2) bf16 fast path (default): bf16 logits through a (possibly near-tie)
    #    softmax legitimately differ at the ~1e-1 level pointwise, so the
    #    pointwise tolerance is loose while the mean error stays small.
    out_bf16 = jax.block_until_ready(nonlocal_block(x, params, tile_n=128))
    assert out_bf16.shape == (B, C, H, W)
    assert jnp.allclose(out_bf16, ref, atol=2.5e-1, rtol=5e-2), "bf16 path mismatch"
    assert float(jnp.mean(jnp.abs(out_bf16 - ref))) < 3e-2, "bf16 path mean error too large"

    print("KERNEL_OK")
</pallas_src>

<mosaic_0001>
module attributes {stable_mosaic.version = 11 : i64} {
  func.func @_nonlocal_kernel(%arg0: i32, %arg1: i32, %arg2: i32, %arg3: memref<1x4x128xf32, #tpu.memory_space<vmem>>, %arg4: memref<4x4xf32, #tpu.memory_space<vmem>>, %arg5: memref<4x1xf32, #tpu.memory_space<vmem>>, %arg6: memref<2x4xf32, #tpu.memory_space<vmem>>, %arg7: memref<2x1xf32, #tpu.memory_space<vmem>>, %arg8: memref<4x2xf32, #tpu.memory_space<vmem>>, %arg9: memref<4x1xf32, #tpu.memory_space<vmem>>, %arg10: memref<1x4x128xf32, #tpu.memory_space<vmem>>, %arg11: memref<2x2xf32, #tpu.memory_space<vmem>>, %arg12: memref<2x2xf32, #tpu.memory_space<vmem>>) attributes {dimension_semantics = [#tpu.dimension_semantics<parallel>, #tpu.dimension_semantics<arbitrary>, #tpu.dimension_semantics<arbitrary>], iteration_bounds = array<i64: 2, 2, 2>, scalar_prefetch = 0 : i64, scratch_operands = 2 : i64, tpu.core_type = #tpu.core_type<tc>, window_params = [{transform_indices = @transform_0, window_bounds = array<i64: 1, 4, 128>}, {pipeline_mode = #tpu.pipeline_mode<synchronous>, transform_indices = @transform_1, window_bounds = array<i64: 4, 4>}, {pipeline_mode = #tpu.pipeline_mode<synchronous>, transform_indices = @transform_2, window_bounds = array<i64: 4, 1>}, {pipeline_mode = #tpu.pipeline_mode<synchronous>, transform_indices = @transform_3, window_bounds = array<i64: 2, 4>}, {pipeline_mode = #tpu.pipeline_mode<synchronous>, transform_indices = @transform_4, window_bounds = array<i64: 2, 1>}, {pipeline_mode = #tpu.pipeline_mode<synchronous>, transform_indices = @transform_5, window_bounds = array<i64: 4, 2>}, {pipeline_mode = #tpu.pipeline_mode<synchronous>, transform_indices = @transform_6, window_bounds = array<i64: 4, 1>}, {transform_indices = @transform_7, window_bounds = array<i64: 1, 4, 128>}]} {
    %c0 = arith.constant 0 : index
    %c0_0 = arith.constant 0 : index
    %c0_1 = arith.constant 0 : index
    %0 = vector.load %arg3[%c0, %c0_0, %c0_1] : memref<1x4x128xf32, #tpu.memory_space<vmem>>, vector<1x4x128xf32>
    %1 = vector.shape_cast %0 : vector<1x4x128xf32> to vector<4x128xf32>
    %c0_i32 = arith.constant 0 : i32
    %2 = arith.cmpi eq, %arg1, %c0_i32 : i32
    %c0_i32_2 = arith.constant 0 : i32
    %3 = arith.cmpi eq, %arg2, %c0_i32_2 : i32
    %4 = arith.andi %2, %3 : i1
    %5 = arith.extui %4 : i1 to i32
    %c0_i32_3 = arith.constant 0 : i32
    %6 = arith.cmpi ne, %5, %c0_i32_3 : i32
    scf.if %6 {
      %cst = arith.constant 0.000000e+00 : f32
      %13 = vector.broadcast %cst : f32 to vector<2x2xf32>
      %c0_7 = arith.constant 0 : index
      %c0_8 = arith.constant 0 : index
      %14 = vector.load %arg11[%c0_7, %c0_8] : memref<2x2xf32, #tpu.memory_space<vmem>>, vector<2x2xf32>
      tpu.vector_store %arg11[%c0_7, %c0_8], %13 {strides = array<i32>} : memref<2x2xf32, #tpu.memory_space<vmem>>, vector<2x2xf32>,
    } else {
    }
    %c0_i32_4 = arith.constant 0 : i32
    %7 = arith.cmpi eq, %arg1, %c0_i32_4 : i32
    %8 = arith.extui %7 : i1 to i32
    %c0_i32_5 = arith.constant 0 : i32
    %9 = arith.cmpi ne, %8, %c0_i32_5 : i32
    scf.if %9 {
      %c0_7 = arith.constant 0 : index
      %c0_8 = arith.constant 0 : index
      %13 = vector.load %arg4[%c0_7, %c0_8] : memref<4x4xf32, #tpu.memory_space<vmem>>, vector<4x4xf32>
      %cst = arith.constant dense<0.000000e+00> : vector<4x128xf32>
      %14 = tpu.matmul %13, %1, %cst {dimension_numbers = #tpu.dot_dimension_numbers<[1], [0], [0], [1], [0, 0, 1, 1], [], []>} : vector<4x4xf32>, vector<4x128xf32>, vector<4x128xf32> -> vector<4x128xf32>
      %c0_9 = arith.constant 0 : index
      %c0_10 = arith.constant 0 : index
      %15 = vector.load %arg5[%c0_9, %c0_10] : memref<4x1xf32, #tpu.memory_space<vmem>>, vector<4x1xf32>
      %16 = vector.broadcast %15 : vector<4x1xf32> to vector<4x128xf32>
      %17 = arith.addf %14, %16 : vector<4x128xf32>
      %18 = vector.extract_strided_slice %17 {offsets = [0, 0], sizes = [2, 128], strides = [1, 1]} : vector<4x128xf32> to vector<2x128xf32>
      %19 = vector.extract_strided_slice %17 {offsets = [2, 0], sizes = [2, 128], strides = [1, 1]} : vector<4x128xf32> to vector<2x128xf32>
      %c0_11 = arith.constant 0 : index
      %c0_12 = arith.constant 0 : index
      %20 = vector.load %arg11[%c0_11, %c0_12] : memref<2x2xf32, #tpu.memory_space<vmem>>, vector<2x2xf32>
      %cst_13 = arith.constant dense<0.000000e+00> : vector<2x2xf32>
      %21 = tpu.matmul %19, %18, %cst_13 {dimension_numbers = #tpu.dot_dimension_numbers<[1], [1], [0], [0], [0, 0, 1, 0], [], []>} : vector<2x128xf32>, vector<2x128xf32>, vector<2x2xf32> -> vector<2x2xf32>
      %22 = arith.addf %20, %21 : vector<2x2xf32>
      %c0_14 = arith.constant 0 : index
      %c0_15 = arith.constant 0 : index
      %23 = vector.load %arg11[%c0_14, %c0_15] : memref<2x2xf32, #tpu.memory_space<vmem>>, vector<2x2xf32>
      tpu.vector_store %arg11[%c0_14, %c0_15], %22 {strides = array<i32>} : memref<2x2xf32, #tpu.memory_space<vmem>>, vector<2x2xf32>,
    } else {
    }
    %c1_i32 = arith.constant 1 : i32
    %10 = arith.cmpi eq, %arg1, %c1_i32 : i32
    %11 = arith.extui %10 : i1 to i32
    %c0_i32_6 = arith.constant 0 : i32
    %12 = arith.cmpi ne, %11, %c0_i32_6 : i32
    scf.if %12 {
      %c0_i32_7 = arith.constant 0 : i32
      %13 = arith.cmpi eq, %arg2, %c0_i32_7 : i32
      %14 = arith.extui %13 : i1 to i32
      %c0_i32_8 = arith.constant 0 : i32
      %15 = arith.cmpi ne, %14, %c0_i32_8 : i32
      scf.if %15 {
        %c0_24 = arith.constant 0 : index
        %c0_25 = arith.constant 0 : index
        %32 = vector.load %arg11[%c0_24, %c0_25] : memref<2x2xf32, #tpu.memory_space<vmem>>, vector<2x2xf32>
        %cst_26 = arith.constant dense<0xFF800000> : vector<2xf32>
        %33 = vector.multi_reduction <maximumf>, %32, %cst_26 [1] : vector<2x2xf32> to vector<2xf32>
        %34 = vector.shape_cast %33 : vector<2xf32> to vector<2x1xf32>
        %35 = vector.broadcast %34 : vector<2x1xf32> to vector<2x2xf32>
        %36 = arith.subf %32, %35 : vector<2x2xf32>
        %37 = math.exp %36 : vector<2x2xf32>
        %cst_27 = arith.constant dense<0.000000e+00> : vector<2xf32>
        %38 = vector.multi_reduction <add>, %37, %cst_27 [1] : vector<2x2xf32> to vector<2xf32>
        %39 = vector.shape_cast %38 : vector<2xf32> to vector<2x1xf32>
        %40 = tpu.reciprocal %39 {approx = true} : vector<2x1xf32> -> vector<2x1xf32>
        %41 = vector.broadcast %40 : vector<2x1xf32> to vector<2x2xf32>
        %42 = arith.mulf %37, %41 : vector<2x2xf32>
        %c0_28 = arith.constant 0 : index
        %c0_29 = arith.constant 0 : index
        %43 = vector.load %arg12[%c0_28, %c0_29] : memref<2x2xf32, #tpu.memory_space<vmem>>, vector<2x2xf32>
        tpu.vector_store %arg12[%c0_28, %c0_29], %42 {strides = array<i32>} : memref<2x2xf32, #tpu.memory_space<vmem>>, vector<2x2xf32>,
      } else {
      }
      %c0_9 = arith.constant 0 : index
      %c0_10 = arith.constant 0 : index
      %16 = vector.load %arg6[%c0_9, %c0_10] : memref<2x4xf32, #tpu.memory_space<vmem>>, vector<2x4xf32>
      %cst = arith.constant dense<0.000000e+00> : vector<2x128xf32>
      %17 = tpu.matmul %16, %1, %cst {dimension_numbers = #tpu.dot_dimension_numbers<[1], [0], [0], [1], [0, 0, 1, 1], [], []>} : vector<2x4xf32>, vector<4x128xf32>, vector<2x128xf32> -> vector<2x128xf32>
      %c0_11 = arith.constant 0 : index
      %c0_12 = arith.constant 0 : index
      %18 = vector.load %arg7[%c0_11, %c0_12] : memref<2x1xf32, #tpu.memory_space<vmem>>, vector<2x1xf32>
      %19 = vector.broadcast %18 : vector<2x1xf32> to vector<2x128xf32>
      %20 = arith.addf %17, %19 : vector<2x128xf32>
      %c0_13 = arith.constant 0 : index
      %c0_14 = arith.constant 0 : index
      %21 = vector.load %arg12[%c0_13, %c0_14] : memref<2x2xf32, #tpu.memory_space<vmem>>, vector<2x2xf32>
      %cst_15 = arith.constant dense<0.000000e+00> : vector<2x128xf32>
      %22 = tpu.matmul %21, %20, %cst_15 {dimension_numbers = #tpu.dot_dimension_numbers<[0], [0], [1], [1], [0, 1, 1, 1], [], []>} : vector<2x2xf32>, vector<2x128xf32>, vector<2x128xf32> -> vector<2x128xf32>
      %c0_16 = arith.constant 0 : index
      %c0_17 = arith.constant 0 : index
      %23 = vector.load %arg8[%c0_16, %c0_17] : memref<4x2xf32, #tpu.memory_space<vmem>>, vector<4x2xf32>
      %cst_18 = arith.constant dense<0.000000e+00> : vector<4x128xf32>
      %24 = tpu.matmul %23, %22, %cst_18 {dimension_numbers = #tpu.dot_dimension_numbers<[1], [0], [0], [1], [0, 0, 1, 1], [], []>} : vector<4x2xf32>, vector<2x128xf32>, vector<4x128xf32> -> vector<4x128xf32>
      %c0_19 = arith.constant 0 : index
      %c0_20 = arith.constant 0 : index
      %25 = vector.load %arg9[%c0_19, %c0_20] : memref<4x1xf32, #tpu.memory_space<vmem>>, vector<4x1xf32>
      %26 = vector.broadcast %25 : vector<4x1xf32> to vector<4x128xf32>
      %27 = arith.addf %24, %26 : vector<4x128xf32>
      %28 = arith.addf %27, %1 : vector<4x128xf32>
      %c0_21 = arith.constant 0 : index
      %c0_22 = arith.constant 0 : index
      %c0_23 = arith.constant 0 : index
      %29 = vector.load %arg10[%c0_21, %c0_22, %c0_23] : memref<1x4x128xf32, #tpu.memory_space<vmem>>, vector<1x4x128xf32>
      %30 = vector.shape_cast %29 : vector<1x4x128xf32> to vector<4x128xf32>
      %31 = vector.shape_cast %28 : vector<4x128xf32> to vector<1x4x128xf32>
      tpu.vector_store %arg10[%c0_21, %c0_22, %c0_23], %31 {strides = array<i32>} : memref<1x4x128xf32, #tpu.memory_space<vmem>>, vector<1x4x128xf32>,
    } else {
    }
    return
  }
  func.func @transform_0(%arg0: i32, %arg1: i32, %arg2: i32) -> (i32, i32, i32) {
    %c0_i32 = arith.constant 0 : i32
    %c0_i32_0 = arith.constant 0 : i32
    return %arg0, %c0_i32, %arg2 : i32, i32, i32
  }
  func.func @transform_1(%arg0: i32, %arg1: i32, %arg2: i32) -> (i32, i32) {
    %c0_i32 = arith.constant 0 : i32
    %c0_i32_0 = arith.constant 0 : i32
    %c0_i32_1 = arith.constant 0 : i32
    return %c0_i32, %c0_i32_0 : i32, i32
  }
  func.func @transform_2(%arg0: i32, %arg1: i32, %arg2: i32) -> (i32, i32) {
    %c0_i32 = arith.constant 0 : i32
    %c0_i32_0 = arith.constant 0 : i32
    %c0_i32_1 = arith.constant 0 : i32
    return %c0_i32, %c0_i32_0 : i32, i32
  }
  func.func @transform_3(%arg0: i32, %arg1: i32, %arg2: i32) -> (i32, i32) {
    %c0_i32 = arith.constant 0 : i32
    %c0_i32_0 = arith.constant 0 : i32
    %c0_i32_1 = arith.constant 0 : i32
    return %c0_i32, %c0_i32_0 : i32, i32
  }
  func.func @transform_4(%arg0: i32, %arg1: i32, %arg2: i32) -> (i32, i32) {
    %c0_i32 = arith.constant 0 : i32
    %c0_i32_0 = arith.constant 0 : i32
    %c0_i32_1 = arith.constant 0 : i32
    return %c0_i32, %c0_i32_0 : i32, i32
  }
  func.func @transform_5(%arg0: i32, %arg1: i32, %arg2: i32) -> (i32, i32) {
    %c0_i32 = arith.constant 0 : i32
    %c0_i32_0 = arith.constant 0 : i32
    %c0_i32_1 = arith.constant 0 : i32
    return %c0_i32, %c0_i32_0 : i32, i32
  }
  func.func @transform_6(%arg0: i32, %arg1: i32, %arg2: i32) -> (i32, i32) {
    %c0_i32 = arith.constant 0 : i32
    %c0_i32_0 = arith.constant 0 : i32
    %c0_i32_1 = arith.constant 0 : i32
    return %c0_i32, %c0_i32_0 : i32, i32
  }
  func.func @transform_7(%arg0: i32, %arg1: i32, %arg2: i32) -> (i32, i32, i32) {
    %0 = arith.muli %arg2, %arg1 : i32
    %c0_i32 = arith.constant 0 : i32
    %c0_i32_0 = arith.constant 0 : i32
    return %arg0, %c0_i32, %0 : i32, i32, i32
  }
}

</mosaic_0001>

<bundles_post_ra>
// kernel: tpu_custom_call.1
= control target key start
LH: loop header
LB: loop body
LE: loop exit
PB: predicated region body
PF: predicated region fallthrough
CT: control target
= control target key end

     0   :  { %s1269_s0 = inlined_call_operand.hbm [shape: f32[2,4,256], index: 0, kind: input, shape index: {}]   ;;  %s1270_s1 = inlined_call_operand.vmem [shape: f32[4,4], index: 1, kind: input, shape index: {}]   ;;  %s1271_s2 = inlined_call_operand.vmem [shape: f32[4,1], index: 2, kind: input, shape index: {}]   ;;  %s1272_s3 = inlined_call_operand.vmem [shape: f32[2,4], index: 3, kind: input, shape index: {}]   ;;  %s1273_s4 = inlined_call_operand.vmem [shape: f32[2,1], index: 4, kind: input, shape index: {}]   ;;  %s1274_s5 = inlined_call_operand.vmem [shape: f32[4,2], index: 5, kind: input, shape index: {}]   ;;  %s1275_s6 = inlined_call_operand.vmem [shape: f32[4,1], index: 6, kind: input, shape index: {}]   ;;  %s1276_s7 = inlined_call_operand.hbm [shape: f32[2,4,256], index: 7, kind: output, shape index: {}]  }
   0x1   :  { %1283 = sst [smem:[#allocation17_spill]] %s1269_s0 }
   0x2   :  { %1284 = sst [smem:[#allocation18_spill]] %s1270_s1 }
   0x3   :  { %1285 = sst [smem:[#allocation19_spill]] %s1271_s2 }
   0x4   :  { %1286 = sst [smem:[#allocation20_spill]] %s1274_s5 }
   0x5   :  { %1287 = sst [smem:[#allocation21_spill]] %s1275_s6 }
   0x6   :  { %1288 = sst [smem:[#allocation22_spill]] %s1276_s7 }
   0x7   :  { %12 = vsyncpa [#allocation5], 0 }
   0x8   :  { %14 = vsyncpa [#allocation5 + $0x1], 0 }
   0x9   :  { %15 = vsyncpa [#allocation6], 0 }
   0xa   :  { %17 = vsyncpa [#allocation6 + $0x1], 0  ;;  %s1028_s24 = smov 0   ;;  %s1030_s25 = smov 0  }
   0xb   :  { %s1032_s26 = smov 0   ;;  %s1034_s27 = smov 0  }
   0xc   :  { %s1036_s28 = smov 0   ;;  %s1038_s29 = smov 0  }
   0xd   :  { %s1040_s30 = smov 0   ;;  %s1042_s8 = smov 0  }
   0xe   :  { %s1044_s9 = smov 0   ;;  %s1046_s10 = smov 0  }
   0xf   :  { %s1048_s11 = smov 0   ;;  %s1050_s12 = smov 0  }
  0x10   :  { %s1052_s13 = smov 0  }
  0x11 LB: > { %1289 = sst [smem:[#allocation10_spill]] %s935_s24  ;;  %s660_s14 = sadd.s32 4294967295, %s983_s13   ;;  %s983_s13 = sphi %s1052_s13, %s23_s13   ;;  %s979_s12 = sphi %s1050_s12, %s1325_s12   ;;  %s975_s11 = sphi %s1048_s11, %s1314_s11   ;;  %s971_s10 = sphi %s1046_s10, %s1324_s10   ;;  %s967_s9 = sphi %s1044_s9, %s1323_s9   ;;  %s963_s8 = sphi %s1042_s8, %s1312_s8   ;;  %s959_s30 = sphi %s1040_s30, %s1322_s30   ;;  %s955_s29 = sphi %s1038_s29, %s1321_s29   ;;  %s951_s28 = sphi %s1036_s28, %s1320_s28   ;;  %s947_s27 = sphi %s1034_s27, %s1319_s27   ;;  %s943_s26 = sphi %s1032_s26, %s1318_s26   ;;  %s939_s25 = sphi %s1030_s25, %s1317_s25   ;;  %s935_s24 = sphi %s1028_s24, %s1316_s24  }
  0x12   : > { %1290 = sst [smem:[#allocation11_spill]] %s967_s9  ;;  %s35_s16 = sadd.s32 1, %s971_s10 }
  0x13   : > { %1291 = sst [smem:[#allocation12_spill]] %s975_s11  ;;  %s38_s17 = sadd.s32 1, %s975_s11 }
  0x14   : > { %p36_p0 = scmp.ge.s32.totalorder %s35_s16, 2  ;;  %s42_s18 = sadd.s32 1, %s979_s12 }
  0x15   : > { %p58_p1 = scmp.ne.s32.totalorder %s955_s29, %s951_s28  ;;  %p59_p2 = scmp.eq.s32.totalorder %s983_s13, 0 }
  0x16   : > { %s1327_s16 = smov (%p36_p0, %s35_s16), 0  ;;  %s1329_s17 = smov (!%p36_p0, %s38_s17), %s975_s11 }
  0x17   : > { %1292 = sst [smem:[#allocation13_spill]] %s1327_s16  ;;  %s47_s20 = ssub.s32 %s971_s10, %s1327_s16 }
  0x18   : > { %p40_p3 = scmp.ge.s32.totalorder %s1329_s17, 2  ;;  %p64_p4 = scmp.ne.s32.totalorder %s951_s28, %s947_s27 }
  0x19   : > { %p1106_p5 = por %p59_p2, %p58_p1  ;;  %p65_p6 = scmp.eq.s32.totalorder %s660_s14, 0 }
  0x1a   : > { %s1331_s17 = smov (%p40_p3, %s1329_s17), 0  ;;  %s1333_s18 = smov (!%p40_p3, %s42_s18), %s979_s12 }
  0x1b   : > { %1294 = sst [smem:[#allocation14_spill]] %s1331_s17  ;;  %p1113_p7 = por %p65_p6, %p64_p4 }
  0x1c   : > { %s200_s23 = smul.u32 %s971_s10, %s975_s11  ;;  %p44_p8 = scmp.ge.s32.totalorder %s1333_s18, 2 }
  0x1d   : > { %s201_s27 = smul.u32 %s1331_s17, %s1327_s16  ;;  %s207_s19 = sadd.s32 1, %s943_s26 }
  0x1e   : > { %p217_p9 = scmp.ne.s32.totalorder %s943_s26, %s939_s25  ;;  %s1335_s18 = smov (%p44_p8, %s1333_s18), 0 }
  0x1f   : > { %1296 = sst [smem:[#allocation15_spill]] %s1335_s18  ;;  %s203_s15 = ssub.s32 %s200_s23, %s201_s27 }
  0x20   : > { %p218_p10 = scmp.eq.s32.totalorder %s660_s14, 7  ;;  %s46_s7 = ssub.s32 %s979_s12, %s1335_s18 }
  0x21   : > { %p223_p11 = scmp.ne.s32.totalorder %s939_s25, %s935_s24  ;;  %s48_s9 = sor.u32 %s47_s20, %s46_s7 }
  0x22   : > { %s204_s11 = sor.u32 %s203_s15, %s46_s7  ;;  %p49_p12 = scmp.eq.s32.totalorder %s48_s9, 0 }
  0x23   : > { %p205_p13 = scmp.eq.s32.totalorder %s204_s11, 0  ;;  %p1130_p0 = por %p218_p10, %p217_p9 }
  0x24   : > { %s1298_s16 = sadd.s32 4294967294, %s983_s13   ;;  %s1299_s5 = sadd.s32 1, %s955_s29 }
  0x25   : > { %p224_p1 = scmp.eq.s32.totalorder %s1298_s16, 7  ;;  %p698_p3 = scmp.lt.s32.totalorder %s983_s13, 8 }
  0x26   : > { %s1139_s6 = scalar_select %p49_p12, %s955_s29, %s1299_s5  }
  0x27   : > { %s1142_s23 = scalar_select %p205_p13, %s943_s26, %s207_s19  }
  0x28   : > { %1300 = sst [smem:[#allocation16_spill]] %s1139_s6  ;;  %p1144_p2 = por %p224_p1, %p223_p11 }
  0x29   : > { %s262_s7 = sand.u32 1, %s955_s29   ;;  %s665_s11 = sshll.u32 %s979_s12, 1 }
  0x2a   : > { %s664_s9 = sshll.u32 %s262_s7, 2  ;;  %s270_s15 = sadd.s32 %s971_s10, %s665_s11 }
  0x2b   : > { %s266_s20 = scalar_lea.vmem [#allocation4], %s664_s9  ;;  %s666_s18 = sshll.u32 %s270_s15, 2 }
  0x2c   : > { %s276_s27 = sshll.u32 %s266_s20, 4  ;;  %s1302_s0 = sld [smem:[#allocation17_spill]]  ;;  %s277_s27 = int_to_ptr.vmem [resolvable:$true] %s276_s27 }
  0x2d   : > { %p691_p4 = pnand %p698_p3, %p1106_p5  ;;  %p667_p6 = scmp.ge.s32.totalorder %s983_s13, 1 }
  0x2e   : > { %s263_s6 = scalar_lea.sflag [#allocation5], %s262_s7  ;;  %p281_p8 = scmp.lt.s32.totalorder %s983_s13, 9 }
  0x30   : > { %p282_p9 = pnand %p667_p6, %p281_p8 }
  0x31   : > { %s287_s9 = sand.u32 (!%p282_p9), 1, %s951_s28  }
  0x32   : > { %s272_s5 = scalar_lea.hbm %s1302_s0, %s666_s18  ;;  %285 = sbr.rel (%p282_p9) target bundleno = 1093 (0x445), region = 48 }
  0x33   : > { %s274_s19 = sshll.u32 %s272_s5, 4  ;;  %s668_s11 = sshll.u32 (!%p282_p9), %s287_s9, 2  ;;  %s275_s19 = int_to_ptr.hbm [resolvable:$true] %s274_s19 }
  0x34   : > { %693 = dma.hbm_to_vmem [thread:$0]  (!%p691_p4), %s275_s19, 64, %s277_s27, %s263_s6  }
  0x35   : > { %s288_s15 = scalar_lea.sflag (!%p282_p9), [#allocation5], %s287_s9  ;;  %s291_s20 = scalar_lea.vmem (!%p282_p9), [#allocation4], %s668_s11 }
  0x37   : > { %926 = dma.done.wait (%p1113_p7), %s288_s15, 64  }
  0x38   : > { %928 = vsyncadd (%p1113_p7), %s288_s15, 4294967232  ;;  %s320_s24 = sand.u32 1, %s939_s25   ;;  %p325_p5 = scmp.eq.s32.totalorder %s963_s8, 0  ;;  %v1171_v0 = vld [vmem:[%s291_s20] sm:$0xf] }
  0x39   : > { %s1168_s6 = sshll.u32 %s320_s24, 2  ;;  %p326_p10 = scmp.eq.s32.totalorder %s959_s30, 0 }
  0x3a   : > { %s322_s18 = scalar_lea.vmem [#allocation7], %s1168_s6 }
  0x3b   : > { %p327_p11 = pnand %p326_p10, %p325_p5 }
  0x3d   : > { %330 = sbr.rel (%p327_p11) target bundleno = 68 (0x44), region = 56 }
  0x42   : > { %vm331_vm0 = vcmask 9216   ;;  %v985_v1 = vmov 0.0  }
  0x43   : > { %332 = vst.msk [vmem:[#allocation2] sm:$0x3] %vm331_vm0, %v985_v1 }
  0x44 PF: > { %p670_p7 = scmp.ne.s32.totalorder %s963_s8, 0 }
  0x45   : > { %s1303_s1 = sld [smem:[#allocation18_spill]] (!%p670_p7) }
  0x46   : > { %335 = sbr.rel (%p670_p7) target bundleno = 337 (0x151), region = 60  ;;  %s1304_s2 = sld [smem:[#allocation19_spill]] (!%p670_p7) }
  0x4b   : > { %vm347_vm1 = vcmask 1043456   ;;  %v336_v2 = vld [vmem:[%s1303_s1] sm:$0xf]  ;;  %vm343_vm2 = vcmask 31744   ;;  %v986_v3 = vmov 0   ;;  %vm396_vm3 = vcmask 9216  }
  0x4c   : > { %671 = vmatpush.msk.msra.mxu0 %vm347_vm1, %v1171_v0  ;;  %808 = vset.pattern.permute.xlu0 %v986_v3  ;;  %v337_v4 = vld [vmem:[%s1304_s2] sm:$0xf] }
  0x4d   : > { %672 = vmatmul.msk.f32.vlgmr.msra.gmra.mxu0 %vm343_vm2, %v336_v2  ;;  %340 = vperm.xlu0 %808, %v337_v4   ;;  %v371_v9 = vld [vmem:[#allocation2] sm:$0x3] }
  0xbf   : > { %v341_v5 = vpop.permute.xlu0 %340 }
  0xca   : > { %v368_v6 = vpop.f32.mrf.mxu0 }
  0xcb   : > { %v369_v7 = vadd.f32 %v368_v6, %v341_v5 }
  0xcd   : > { %390 = vmatpush.xpose.msra.mxu1 %v369_v7  ;;  %v373_v8 = vrot.slane %v369_v7, 2 }
  0xd0   : > { %391 = vmatmul.f32.vlgmr.msra.gmra.mxu1 %v373_v8 }
 0x14d   : > { %v392_v10 = vpop.f32.mrf.mxu1 }
 0x14e   : > { %v395_v11 = vadd.f32 %v392_v10, %v371_v9 }
 0x150   : > { %397 = vst.msk [vmem:[#allocation2] sm:$0x3] %vm396_vm3, %v395_v11 }
 0x151 PF: > { %p673_p12 = scmp.ne.s32.totalorder %s963_s8, 1 }
 0x152   : > { %p674_p13 = scmp.ne.s32.totalorder (!%p673_p12), %s959_s30, 0 }
 0x153   : > { %401 = sbr.rel (%p673_p12) target bundleno = 1070 (0x42e), region = 64 }
 0x158   : > { %404 = sbr.rel (%p674_p13) target bundleno = 605 (0x25d), region = 68 }
 0x15d   : > { %v405_v12 = vld [vmem:[#allocation2] sm:$0x3]  ;;  %vm406_vm4 = vcmask 9216  }
 0x15e   : > { %v407_v13 = vsel %vm406_vm4, %v405_v12, -inf }
 0x15f   : > { %408 = vmax.xlane.f32.xlu0 %v407_v13 }
 0x1d2   : > { %v409_v14 = vpop.xlane.xlu0 %408 }
 0x1d3   : > { %v410_v15 = vsub.f32 %v405_v12, %v409_v14 }
 0x1d5   : > { %v411_v16 = vmul.f32 1.442695, %v410_v15 }
 0x1d7   : > { %809 = vpow2.f32 %v411_v16 }
 0x1dd   : > { %v810_v17 = vpop.eup %809 }
 0x1de   : > { %v413_v18 = vsel %vm406_vm4, %v810_v17, 0.0 }
 0x1df   : > { %414 = vadd.xlane.f32.xlu0 %v413_v18 }
 0x252   : > { %v415_v19 = vpop.xlane.xlu0 %414 }
 0x253   : > { %811 = vrcp.f32 %v415_v19 }
 0x259   : > { %v812_v20 = vpop.eup %811 }
 0x25a   : > { %v417_v21 = vmul.f32 %v812_v20, %v810_v17 }
 0x25c   : > { %418 = vst.msk [vmem:[#allocation3] sm:$0x3] %vm406_vm4, %v417_v21 }
 0x25d PF: > { %vm430_vm5 = vcmask 1043456   ;;  %v420_v22 = vld [vmem:[%s1273_s4] sm:$0x3]  ;;  %v987_v24 = vmov 0   ;;  %vm426_vm6 = vcmask 31744   ;;  %vm491_vm7 = vcmask 1041408  }
 0x25e   : > { %v419_v23 = vld [vmem:[%s1272_s3] sm:$0x3]  ;;  %675 = vmatpush.msk.msra.mxu0 %vm430_vm5, %v1171_v0  ;;  %813 = vset.pattern.permute.xlu0 %v987_v24  ;;  %vm487_vm8 = vcmask 15360   ;;  %s1305_s20 = sld [smem:[#allocation21_spill]] }
 0x25f   : > { %423 = vperm.xlu0 %813, %v420_v22   ;;  %676 = vmatmul.msk.f32.vlgmr.msra.gmra.mxu0 %vm426_vm6, %v419_v23  ;;  %s1306_s7 = sld [smem:[#allocation20_spill]] }
 0x260   : > { %814 = vset.pattern.permute.xlu1 %v987_v24 }
 0x263   : > { %v454_v25 = vld [vmem:[#allocation3] sm:$0x3] }
 0x264   : > { %v516_v30 = vld [vmem:[%s1305_s20] sm:$0xf] }
 0x265   : > { %519 = vperm.xlu1 %814, %v516_v30   ;;  %v515_v31 = vld [vmem:[%s1306_s7] sm:$0xf] }
 0x281   : > { %455 = vxpose.xlu0.b32.start.end [1/1] (short) (narrow) %v454_v25, 8 }
 0x2d1   : > { %v424_v26 = vpop.permute.xlu0 %423 }
 0x2d7   : > { %v520_v33 = vpop.permute.xlu1 %519 }
 0x2dc   : > { %v451_v27 = vpop.f32.mrf.mxu0 }
 0x2dd   : > { %v452_v28 = vadd.f32 %v451_v27, %v424_v26 }
 0x2df   : > { %677 = vmatpush.msk.msra.mxu1 %vm491_vm7, %v452_v28 }
 0x325   : > { %v471_v29 = vpop.trf.xlu0 }
 0x326   : > { %678 = vmatmul.msk.f32.vlgmr.msra.gmra.mxu1 %vm487_vm8, %v471_v29 }
 0x3a3   : > { %v512_v32 = vpop.f32.mrf.mxu1 }
 0x3a4   : > { %679 = vmatpush.msk.msra.mxu2 %vm491_vm7, %v512_v32 }
 0x3a5   : > { %680 = vmatmul.msk.f32.vlgmr.msra.gmra.mxu2 %vm487_vm8, %v515_v31 }
 0x428   : > { %v545_v34 = vpop.f32.mrf.mxu2 }
 0x429   : > { %v546_v35 = vadd.f32 %v545_v34, %v520_v33 }
 0x42b   : > { %v548_v36 = vadd.f32 %v546_v35, %v1171_v0 }
 0x42d   : > { %549 = vst [vmem:[%s322_s18] sm:$0xf] %v548_v36 }
 0x42e PF: > { %s1307_s27 = sld [smem:[#allocation11_spill]]  ;;  %s558_s16 = smul.u32 %s959_s30, %s963_s8 }
 0x42f   : > { %s566_s19 = sshll.u32 %s322_s18, 4  ;;  %s1308_s21 = sld [smem:[#allocation22_spill]]  ;;  %s567_s19 = int_to_ptr.vmem [resolvable:$true] %s566_s19 }
 0x430   : > { %s551_s0 = scalar_lea.sflag [#allocation6], %s320_s24 }
 0x434   : > { %s682_s5 = sshll.u32 %s1307_s27, 1 }
 0x435   : > { %s562_s9 = sadd.s32 %s682_s5, %s558_s16  ;;  %s865_s6 = scalar_lea.hbm %s1308_s21, 16 }
 0x436   : > { %s683_s11 = sshll.u32 %s562_s9, 2 }
 0x437   : > { %s564_s22 = scalar_lea.hbm %s1308_s21, %s683_s11 }
 0x438   : > { %s568_s7 = sshll.u32 %s564_s22, 4  ;;  %s569_s7 = int_to_ptr.hbm [resolvable:$true] %s568_s7 }
 0x439   : > { %s859_s1 = sshra.s32 %s569_s7, 4  ;;  %s860_s1 = int_to_ptr.hbm [resolvable:$true] %s859_s1 }
 0x43a   : > { %s861_s2 = scalar_lea.hbm %s860_s1, 4  ;;  %p866_p6 = scmp.lt.s32.totalorder %s860_s1, %s1308_s21 }
 0x43b   : > { %p862_p1 = scmp.ne.s32.totalorder %s860_s1, %s861_s2  ;;  %p867_p8 = scmp.lt.s32.totalorder %s865_s6, %s861_s2 }
 0x43d   : > { %p863_p3 = pnand %p862_p1, %p1130_p0  ;;  %p868_p9 = por %p867_p8, %p866_p6 }
 0x43f   : > { %p864_p4 = pneg %p863_p3 }
 0x441   : > { %p869_p5 = pnand %p868_p9, %p864_p4 }
 0x443   : > { %872 = shalt.err (!%p869_p5)
}
 0x444   : > { %688 = dma.vmem_to_hbm [thread:$0]  (%p1130_p0), %s567_s19, 64, %s569_s7, %s551_s0  }
 0x445 PF: > { %s1309_s24 = sld [smem:[#allocation10_spill]]  ;;  %p699_p10 = scmp.ge.s32.totalorder %s983_s13, 2 }
 0x447   : > { %p695_p11 = pnand %p699_p10, %p1144_p2 }
 0x449   : > { %p696_p7 = pneg %p695_p11 }
 0x44b   : > { %s580_s16 = sand.u32 1, %s1309_s24  }
 0x44c   : > { %s581_s5 = scalar_lea.sflag [#allocation6], %s580_s16 }
 0x44d   : > { %930 = dma.done.wait (%p696_p7), %s581_s5, 64  }
 0x44e   : > { %932 = vsyncadd (%p696_p7), %s581_s5, 4294967232  ;;  %s23_s13 = sadd.s32 1, %s983_s13   ;;  %s1311_s0 = sld [smem:[#allocation16_spill]] }
 0x44f   : > { %p1225_p12 = scmp.ge.s32.totalorder %s23_s13, 10   ;;  %s1312_s8 = sld [smem:[#allocation12_spill]] }
 0x450   : > { %s1313_s2 = sld [smem:[#allocation13_spill]]  ;;  %s1316_s24 = smov %s939_s25 }
 0x451   : > { %s1314_s11 = sld [smem:[#allocation14_spill]]  ;;  %s1317_s25 = smov %s943_s26 }
 0x452   : > { %s1315_s17 = sld [smem:[#allocation15_spill]]  ;;  %s1318_s26 = smov %s1142_s23 }
 0x453   : > { %s1319_s27 = smov %s951_s28  ;;  %s1320_s28 = smov %s955_s29 }
 0x454   : > { %s1321_s29 = smov %s1311_s0  ;;  %s1322_s30 = smov %s971_s10 }
 0x455   : > { %s1323_s9 = smov %s979_s12  ;;  %22 = sbr.rel (!%p1225_p12) target bundleno = 17 (0x11), region = 109 }
 0x456   : > { %s1324_s10 = smov %s1313_s2 }
 0x458   : > { %s1325_s12 = smov %s1315_s17 }
 0x45a   :  { %587 = vsyncpa [#allocation5], 1 }
 0x45b   :  { %589 = vsyncpa [#allocation5 + $0x1], 1 }
 0x45c   :  { %590 = vsyncpa [#allocation6], 1 }
 0x45d   :  { %592 = vsyncpa [#allocation6 + $0x1], 1 }

</bundles_post_ra>
